<compile_context>
chip_gen: v6e
topology: v6e:2x2x1
jax: 0.10.0
libtpu: 0.0.40
codegen_flags: <defaults>
</compile_context>

<pallas_src>
import functools

import jax
import jax.numpy as jnp
from jax.experimental import pallas as pl
from jax.experimental.pallas import tpu as pltpu


# ------------------------------ Pallas kernel ------------------------------ #

def _qnet_kernel(x_ref, w1_ref, b1_ref, w2_ref, b2_ref, w3_ref, b3_ref, o_ref):
    # Fused 3-layer MLP on one batch tile. f32 MXU accumulation throughout.
    h = jnp.dot(x_ref[...], w1_ref[...], preferred_element_type=jnp.float32)
    h = jnp.maximum(h + b1_ref[...], 0.0)
    h = jnp.dot(h, w2_ref[...], preferred_element_type=jnp.float32)
    h = jnp.maximum(h + b2_ref[...], 0.0)
    o = jnp.dot(h, w3_ref[...], preferred_element_type=jnp.float32) + b3_ref[...]
    o_ref[...] = o.astype(o_ref.dtype)


def q_network_forward(params, state, *, tm=512):
    """state: (B, state_dim) f32 -> (B, action_num) f32."""
    M, K = state.shape
    w1, b1 = params["w1"], params["b1"]        # (K, 16),  (16,)
    w2, b2 = params["w2"], params["b2"]        # (16, 32), (32,)
    w3, b3 = params["w3"], params["b3"]        # (32, A),  (A,)
    H1, H2, A = w1.shape[1], w2.shape[1], w3.shape[1]

    # Batch tile: whole batch when small (block == full dim satisfies the
    # (8,128) rule); otherwise a multiple-of-8 tile, padding only a ragged tail.
    block_m = M if M <= tm else tm
    mp = pl.cdiv(M, block_m) * block_m
    x = state if mp == M else jnp.pad(state, ((0, mp - M), (0, 0)))

    out = pl.pallas_call(
        _qnet_kernel,
        out_shape=jax.ShapeDtypeStruct((mp, A), jnp.float32),
        grid=(mp // block_m,),
        in_specs=[
            pl.BlockSpec((block_m, K), lambda i: (i, 0)),   # batch tile
            pl.BlockSpec((K, H1), lambda i: (0, 0)),        # weights: whole,
            pl.BlockSpec((1, H1), lambda i: (0, 0)),        # VMEM-resident
            pl.BlockSpec((H1, H2), lambda i: (0, 0)),
            pl.BlockSpec((1, H2), lambda i: (0, 0)),
            pl.BlockSpec((H2, A), lambda i: (0, 0)),
            pl.BlockSpec((1, A), lambda i: (0, 0)),
        ],
        out_specs=pl.BlockSpec((block_m, A), lambda i: (i, 0)),
        compiler_params=pltpu.CompilerParams(
            dimension_semantics=("parallel",)),  # v7x: shard batch over both TCs
    )(x, w1, b1.reshape(1, H1), w2, b2.reshape(1, H2), w3, b3.reshape(1, A))

    return out[:M] if mp != M else out


# ------------------------------ params & ref -------------------------------- #

def init_params(key, state_dim, action_num):
    """PyTorch-style Linear init; weights stored pre-transposed as (in, out)."""
    def layer(k, fan_in, fan_out):
        kw, kb = jax.random.split(k)
        bound = 1.0 / float(jnp.sqrt(fan_in))
        w = jax.random.uniform(kw, (fan_in, fan_out), jnp.float32, -bound, bound)
        b = jax.random.uniform(kb, (fan_out,), jnp.float32, -bound, bound)
        return w, b

    k1, k2, k3 = jax.random.split(key, 3)
    w1, b1 = layer(k1, state_dim, 16)
    w2, b2 = layer(k2, 16, 32)
    w3, b3 = layer(k3, 32, action_num)
    return {"w1": w1, "b1": b1, "w2": w2, "b2": b2, "w3": w3, "b3": b3}


def reference_forward(params, state):
    h = jnp.maximum(state @ params["w1"] + params["b1"], 0.0)
    h = jnp.maximum(h @ params["w2"] + params["b2"], 0.0)
    return h @ params["w3"] + params["b3"]


# --------------------------------- main ------------------------------------ #

if __name__ == "__main__":
    key = jax.random.PRNGKey(0)
    pkey, xkey = jax.random.split(key)

    batch, state_dim, action_num = 8, 32, 4
    params = init_params(pkey, state_dim, action_num)
    state = jax.random.normal(xkey, (batch, state_dim), dtype=jnp.float32)

    out = jax.block_until_ready(q_network_forward(params, state))
    ref = jax.block_until_ready(reference_forward(params, state))

    assert out.shape == (batch, action_num), out.shape
    max_diff = float(jnp.max(jnp.abs(out - ref)))
    assert jnp.allclose(out, ref, rtol=1e-3, atol=1e-3), max_diff
    print("KERNEL_OK")
</pallas_src>

<mosaic_0001>
module attributes {stable_mosaic.version = 11 : i64} {
  func.func @_qnet_kernel(%arg0: i32, %arg1: memref<8x32xf32, #tpu.memory_space<vmem>>, %arg2: memref<32x16xf32, #tpu.memory_space<vmem>>, %arg3: memref<1x16xf32, #tpu.memory_space<vmem>>, %arg4: memref<16x32xf32, #tpu.memory_space<vmem>>, %arg5: memref<1x32xf32, #tpu.memory_space<vmem>>, %arg6: memref<32x4xf32, #tpu.memory_space<vmem>>, %arg7: memref<1x4xf32, #tpu.memory_space<vmem>>, %arg8: memref<8x4xf32, #tpu.memory_space<vmem>>) attributes {dimension_semantics = [#tpu.dimension_semantics<parallel>], iteration_bounds = array<i64: 1>, scalar_prefetch = 0 : i64, scratch_operands = 0 : i64, tpu.core_type = #tpu.core_type<tc>, window_params = [{transform_indices = @transform_0, window_bounds = array<i64: 8, 32>}, {pipeline_mode = #tpu.pipeline_mode<synchronous>, transform_indices = @transform_1, window_bounds = array<i64: 32, 16>}, {pipeline_mode = #tpu.pipeline_mode<synchronous>, transform_indices = @transform_2, window_bounds = array<i64: 1, 16>}, {pipeline_mode = #tpu.pipeline_mode<synchronous>, transform_indices = @transform_3, window_bounds = array<i64: 16, 32>}, {pipeline_mode = #tpu.pipeline_mode<synchronous>, transform_indices = @transform_4, window_bounds = array<i64: 1, 32>}, {pipeline_mode = #tpu.pipeline_mode<synchronous>, transform_indices = @transform_5, window_bounds = array<i64: 32, 4>}, {pipeline_mode = #tpu.pipeline_mode<synchronous>, transform_indices = @transform_6, window_bounds = array<i64: 1, 4>}, {transform_indices = @transform_7, window_bounds = array<i64: 8, 4>}]} {
    %c0 = arith.constant 0 : index
    %c0_0 = arith.constant 0 : index
    %0 = vector.load %arg1[%c0, %c0_0] : memref<8x32xf32, #tpu.memory_space<vmem>>, vector<8x32xf32>
    %c0_1 = arith.constant 0 : index
    %c0_2 = arith.constant 0 : index
    %1 = vector.load %arg2[%c0_1, %c0_2] : memref<32x16xf32, #tpu.memory_space<vmem>>, vector<32x16xf32>
    %cst = arith.constant dense<0.000000e+00> : vector<8x16xf32>
    %2 = tpu.matmul %0, %1, %cst {dimension_numbers = #tpu.dot_dimension_numbers<[1], [0], [0], [1], [0, 0, 1, 1], [], []>} : vector<8x32xf32>, vector<32x16xf32>, vector<8x16xf32> -> vector<8x16xf32>
    %c0_3 = arith.constant 0 : index
    %c0_4 = arith.constant 0 : index
    %3 = vector.load %arg3[%c0_3, %c0_4] : memref<1x16xf32, #tpu.memory_space<vmem>>, vector<1x16xf32>
    %4 = vector.broadcast %3 : vector<1x16xf32> to vector<8x16xf32>
    %5 = arith.addf %2, %4 : vector<8x16xf32>
    %cst_5 = arith.constant 0.000000e+00 : f32
    %6 = vector.broadcast %cst_5 : f32 to vector<8x16xf32>
    %7 = arith.maximumf %5, %6 : vector<8x16xf32>
    %c0_6 = arith.constant 0 : index
    %c0_7 = arith.constant 0 : index
    %8 = vector.load %arg4[%c0_6, %c0_7] : memref<16x32xf32, #tpu.memory_space<vmem>>, vector<16x32xf32>
    %cst_8 = arith.constant dense<0.000000e+00> : vector<8x32xf32>
    %9 = tpu.matmul %7, %8, %cst_8 {dimension_numbers = #tpu.dot_dimension_numbers<[1], [0], [0], [1], [0, 0, 1, 1], [], []>} : vector<8x16xf32>, vector<16x32xf32>, vector<8x32xf32> -> vector<8x32xf32>
    %c0_9 = arith.constant 0 : index
    %c0_10 = arith.constant 0 : index
    %10 = vector.load %arg5[%c0_9, %c0_10] : memref<1x32xf32, #tpu.memory_space<vmem>>, vector<1x32xf32>
    %11 = vector.broadcast %10 : vector<1x32xf32> to vector<8x32xf32>
    %12 = arith.addf %9, %11 : vector<8x32xf32>
    %cst_11 = arith.constant 0.000000e+00 : f32
    %13 = vector.broadcast %cst_11 : f32 to vector<8x32xf32>
    %14 = arith.maximumf %12, %13 : vector<8x32xf32>
    %c0_12 = arith.constant 0 : index
    %c0_13 = arith.constant 0 : index
    %15 = vector.load %arg6[%c0_12, %c0_13] : memref<32x4xf32, #tpu.memory_space<vmem>>, vector<32x4xf32>
    %cst_14 = arith.constant dense<0.000000e+00> : vector<8x4xf32>
    %16 = tpu.matmul %14, %15, %cst_14 {dimension_numbers = #tpu.dot_dimension_numbers<[1], [0], [0], [1], [0, 0, 1, 1], [], []>} : vector<8x32xf32>, vector<32x4xf32>, vector<8x4xf32> -> vector<8x4xf32>
    %c0_15 = arith.constant 0 : index
    %c0_16 = arith.constant 0 : index
    %17 = vector.load %arg7[%c0_15, %c0_16] : memref<1x4xf32, #tpu.memory_space<vmem>>, vector<1x4xf32>
    %18 = vector.broadcast %17 : vector<1x4xf32> to vector<8x4xf32>
    %19 = arith.addf %16, %18 : vector<8x4xf32>
    %c0_17 = arith.constant 0 : index
    %c0_18 = arith.constant 0 : index
    %20 = vector.load %arg8[%c0_17, %c0_18] : memref<8x4xf32, #tpu.memory_space<vmem>>, vector<8x4xf32>
    tpu.vector_store %arg8[%c0_17, %c0_18], %19 {strides = array<i32>} : memref<8x4xf32, #tpu.memory_space<vmem>>, vector<8x4xf32>,
    return
  }
  func.func @transform_0(%arg0: i32) -> (i32, i32) {
    %c0_i32 = arith.constant 0 : i32
    %c0_i32_0 = arith.constant 0 : i32
    return %arg0, %c0_i32 : i32, i32
  }
  func.func @transform_1(%arg0: i32) -> (i32, i32) {
    %c0_i32 = arith.constant 0 : i32
    %c0_i32_0 = arith.constant 0 : i32
    %c0_i32_1 = arith.constant 0 : i32
    return %c0_i32, %c0_i32_0 : i32, i32
  }
  func.func @transform_2(%arg0: i32) -> (i32, i32) {
    %c0_i32 = arith.constant 0 : i32
    %c0_i32_0 = arith.constant 0 : i32
    %c0_i32_1 = arith.constant 0 : i32
    return %c0_i32, %c0_i32_0 : i32, i32
  }
  func.func @transform_3(%arg0: i32) -> (i32, i32) {
    %c0_i32 = arith.constant 0 : i32
    %c0_i32_0 = arith.constant 0 : i32
    %c0_i32_1 = arith.constant 0 : i32
    return %c0_i32, %c0_i32_0 : i32, i32
  }
  func.func @transform_4(%arg0: i32) -> (i32, i32) {
    %c0_i32 = arith.constant 0 : i32
    %c0_i32_0 = arith.constant 0 : i32
    %c0_i32_1 = arith.constant 0 : i32
    return %c0_i32, %c0_i32_0 : i32, i32
  }
  func.func @transform_5(%arg0: i32) -> (i32, i32) {
    %c0_i32 = arith.constant 0 : i32
    %c0_i32_0 = arith.constant 0 : i32
    %c0_i32_1 = arith.constant 0 : i32
    return %c0_i32, %c0_i32_0 : i32, i32
  }
  func.func @transform_6(%arg0: i32) -> (i32, i32) {
    %c0_i32 = arith.constant 0 : i32
    %c0_i32_0 = arith.constant 0 : i32
    %c0_i32_1 = arith.constant 0 : i32
    return %c0_i32, %c0_i32_0 : i32, i32
  }
  func.func @transform_7(%arg0: i32) -> (i32, i32) {
    %c0_i32 = arith.constant 0 : i32
    %c0_i32_0 = arith.constant 0 : i32
    return %arg0, %c0_i32 : i32, i32
  }
}

</mosaic_0001>

<bundles_post_ra>
// kernel: tpu_custom_call.1
= control target key start
LH: loop header
LB: loop body
LE: loop exit
PB: predicated region body
PF: predicated region fallthrough
CT: control target
= control target key end

     0   :  { %v337_v0 = vmov 0.0   ;;  %vm338_vm0 = vmmov 0   ;;  %vm38_vm1 = vcmask 261120   ;;  %vm122_vm2 = vcmask 130048   ;;  %s429_s1 = inlined_call_operand.vmem [shape: f32[32,16], index: 1, kind: input, shape index: {}]   ;;  %s430_s0 = inlined_call_operand.vmem [shape: f32[8,32], index: 0, kind: input, shape index: {}]   ;;  %s431_s3 = inlined_call_operand.vmem [shape: f32[16,32], index: 3, kind: input, shape index: {}]   ;;  %s432_s2 = inlined_call_operand.vmem [shape: f32[1,16], index: 2, kind: input, shape index: {}]   ;;  %s433_s5 = inlined_call_operand.vmem [shape: f32[32,4], index: 5, kind: input, shape index: {}]   ;;  %s434_s4 = inlined_call_operand.vmem [shape: f32[1,32], index: 4, kind: input, shape index: {}]   ;;  %s435_s6 = inlined_call_operand.vmem [shape: f32[1,4], index: 6, kind: input, shape index: {}]   ;;  %s436_s7 = inlined_call_operand.vmem [shape: f32[8,4], index: 7, kind: output, shape index: {}]  }
   0x1   :  { %306 = vmatprep.subr.mxu0 %v337_v0  ;;  %v30_v1 = vld [vmem:[%s429_s1 + $0x18] sm:$0xff]  ;;  %v29_v2 = vld [vmem:[%s429_s1 + $0x10] sm:$0xff]  ;;  %314 = vmatprep.mubr.msk.f32.mxu0 %vm338_vm0, %v337_v0  ;;  %v28_v3 = vld [vmem:[%s429_s1 + $0x8] sm:$0xff]  ;;  %vm281_vm3 = vcmask 31744  }
   0x2   :  { %307 = vmatpush3.msra.mxu0 %v30_v1  ;;  %317 = vmatprep.subr.mxu1 %v337_v0  ;;  %v27_v4 = vld [vmem:[%s429_s1] sm:$0xff]  ;;  %v114_v6 = vld [vmem:[%s431_s3 + $0x8] sm:$0xff]  ;;  %v200_v13 = vld [vmem:[%s433_s5 + $0x18] sm:$0xff] }
   0x3   :  { %308 = vmatprep.subr.mxu0 %v337_v0  ;;  %321 = vmatprep.mubr.msk.f32.mxu1 %vm338_vm0, %v337_v0  ;;  %v26_v5 = vld [vmem:[%s430_s0] sm:$0xff]  ;;  %v199_v14 = vld [vmem:[%s433_s5 + $0x10] sm:$0xff]  ;;  %v198_v15 = vld [vmem:[%s433_s5 + $0x8] sm:$0xff] }
   0x4   :  { %309 = vmatpush3.msra.mxu0 %v29_v2  ;;  %318 = vmatpush3.msra.mxu1 %v114_v6  ;;  %v113_v7 = vld [vmem:[%s431_s3] sm:$0xff] }
   0x5   :  { %310 = vmatprep.subr.mxu0 %v337_v0  ;;  %319 = vmatprep.subr.mxu1 %v337_v0  ;;  %v287_v8 = vld [vmem:[%s432_s2] ss:$0 sm:$0xff] }
   0x6   :  { %311 = vmatpush3.msra.mxu0 %v28_v3  ;;  %320 = vmatpush3.msra.mxu1 %v113_v7  ;;  %v197_v16 = vld [vmem:[%s433_s5] sm:$0xff] }
   0x7   :  { %312 = vmatprep.subr.mxu0 %v337_v0  ;;  %324 = vmatprep.subr.mxu1 %v337_v0  ;;  %v289_v17 = vld [vmem:[%s434_s4] ss:$0 sm:$0xff] }
   0x8   :  { %313 = vmatpush3.msra.mxu0 %v27_v4  ;;  %v291_v22 = vld [vmem:[%s435_s6] ss:$0 sm:$0xff] }
   0x9   :  { %315 = vmatmul.mubr.msk.f32.vlgmr.msra.gmra.mxu0 %vm38_vm1, %v26_v5 }
  0xc9   :  { %v108_v9 = vpop.f32.mrf.mxu0 }
  0xca   :  { %v109_v10 = vadd.f32 %v287_v8, %v108_v9 }
  0xcb   :  { %v316_v11 = vpop.f32.mrf.mxu0 }
  0xcc   :  { %v112_v12 = vmax.f32 %v109_v10, 0.0 }
  0xce   :  { %322 = vmatmul.mubr.msk.f32.vlgmr.msra.gmra.mxu1 %vm122_vm2, %v112_v12 }
  0xcf   :  { %325 = vmatpush3.msra.mxu1 %v200_v13  ;;  %332 = vmatprep.mubr.msk.f32.mxu1 %vm338_vm0, %v337_v0 }
  0xd0   :  { %326 = vmatprep.subr.mxu1 %v337_v0 }
  0xd1   :  { %327 = vmatpush3.msra.mxu1 %v199_v14 }
  0xd2   :  { %328 = vmatprep.subr.mxu1 %v337_v0 }
  0xd3   :  { %329 = vmatpush3.msra.mxu1 %v198_v15 }
  0xd4   :  { %330 = vmatprep.subr.mxu1 %v337_v0 }
  0xd5   :  { %331 = vmatpush3.msra.mxu1 %v197_v16 }
 0x18e   :  { %v192_v18 = vpop.f32.mrf.mxu1 }
 0x18f   :  { %v193_v19 = vadd.f32 %v289_v17, %v192_v18 }
 0x190   :  { %v323_v20 = vpop.f32.mrf.mxu1 }
 0x191   :  { %v196_v21 = vmax.f32 %v193_v19, 0.0 }
 0x193   :  { %333 = vmatmul.mubr.msk.f32.vlgmr.msra.gmra.mxu1 %vm38_vm1, %v196_v21 }
 0x253   :  { %v277_v23 = vpop.f32.mrf.mxu1 }
 0x254   :  { %v278_v24 = vadd.f32 %v291_v22, %v277_v23 }
 0x255   :  { %v334_v25 = vpop.f32.mrf.mxu1 }
 0x256   :  { %282 = vst.msk [vmem:[%s436_s7] sm:$0xff] %vm281_vm3, %v278_v24 }

</bundles_post_ra>
